<compile_context>
chip_gen: v7x
topology: tpu7x:2x2x1
jax: 0.10.0
libtpu: 0.0.40
codegen_flags: <defaults>
</compile_context>

<pallas_src>
import jax
import jax.numpy as jnp
from jax.experimental import pallas as pl
from jax.experimental.pallas import tpu as pltpu


# --------------------------- fused decoder kernel ----------------------------
def decoder_kernel(ids_ref, emb_ref, enc_ref, h_init_ref,
                   w_ih0_ref, w_hh0_ref, w_ih1_ref, w_hh1_ref,
                   w_out_ctx_ref, w_out_h_ref, b_ref,
                   out_ref, hidden_ref,
                   h_scratch):
    """One decode step per grid iteration (grid = (T,)).

    ids_ref:      (1, B, 1) int32 token ids for this step
    emb_ref:      (V, E)    bf16 embedding table (row 0 zero: padding_idx=0)
    enc_ref:      (B, S, H) f32 encoder hidden states          (VMEM-resident)
    h_init_ref:   (L, B, H) f32 encoder final hidden, L=2      (VMEM-resident)
    w_ih*/w_hh*:  (In, 3G)/(H, 3G) bf16 gate-padded GRU weights, G=128,
                  gate order (r, z, n), gate k in lanes [k*G, k*G+H)
    w_out_ctx:    (H, V)    bf16 output weight acting on the attention context
    w_out_h:      (H, V)    bf16 output weight acting on the decoder hidden
    b_ref:        (1, V)    f32 output bias
    out_ref:      (1, B, V) f32 log-probabilities for this step
    hidden_ref:   (L, B, H) f32 hidden state after the LAST step
    h_scratch:    (L, B, H) f32 VMEM carry of the hidden state across steps
    """
    t = pl.program_id(0)
    T = pl.num_programs(0)
    B = ids_ref.shape[1]
    V = emb_ref.shape[0]
    H = h_init_ref.shape[2]
    G = w_ih0_ref.shape[1] // 3            # padded gate stride (128-lane aligned)

    # ---- initialize the hidden-state carry at the first step ----
    @pl.when(t == 0)
    def _():
        h_scratch[...] = h_init_ref[...]

    # ---- embedding lookup fused as one-hot @ table on the MXU ----
    ids = ids_ref[0]                                                  # (B, 1) int32
    iota = jax.lax.broadcasted_iota(jnp.int32, (B, V), 1)
    one_hot = (iota == ids).astype(jnp.bfloat16)                      # (B, V)
    x = jnp.dot(one_hot, emb_ref[...],
                preferred_element_type=jnp.float32)                   # (B, E)
    # dropout p=0.0 -> identity

    # ---- 2-layer GRU (bias=False), one step; gate slices are vreg-aligned ----
    def gru_cell(x_f32, h_f32, w_ih_ref, w_hh_ref):
        gi = jnp.dot(x_f32.astype(jnp.bfloat16), w_ih_ref[...],
                     preferred_element_type=jnp.float32)              # (B, 3G)
        gh = jnp.dot(h_f32.astype(jnp.bfloat16), w_hh_ref[...],
                     preferred_element_type=jnp.float32)              # (B, 3G)
        r = jax.nn.sigmoid(gi[:, 0:G] + gh[:, 0:G])                   # (B, G)
        z = jax.nn.sigmoid(gi[:, G:2 * G] + gh[:, G:2 * G])           # (B, G)
        n = jnp.tanh(gi[:, 2 * G:3 * G] + r * gh[:, 2 * G:3 * G])     # (B, G)
        # only lanes [:H] carry real data (padded weight columns are zero);
        # these slices start at lane 0 -> no relayout.
        return (1.0 - z[:, :H]) * n[:, :H] + z[:, :H] * h_f32         # (B, H)

    h0 = gru_cell(x, h_scratch[0], w_ih0_ref, w_hh0_ref)
    h1 = gru_cell(h0, h_scratch[1], w_ih1_ref, w_hh1_ref)
    h_scratch[0] = h0
    h_scratch[1] = h1

    # ---- dot-product attention over encoder states (f32, VPU/XLU) ----
    enc = enc_ref[...]                                                # (B, S, H)
    scores = jnp.sum(enc * h1[:, None, :], axis=2)                    # (B, S)
    m = jnp.max(scores, axis=1, keepdims=True)
    e = jnp.exp(scores - m)
    att_w = e * pl.reciprocal(jnp.sum(e, axis=1, keepdims=True), approx=True)
    ctx = jnp.sum(enc * att_w[:, :, None], axis=1)                    # (B, H)

    # ---- output Linear: two lane-aligned K=H dots (no lane concat) + log_softmax ----
    logits = (jnp.dot(ctx.astype(jnp.bfloat16), w_out_ctx_ref[...],
                      preferred_element_type=jnp.float32)
              + jnp.dot(h1.astype(jnp.bfloat16), w_out_h_ref[...],
                        preferred_element_type=jnp.float32)
              + b_ref[...])                                           # (B, V)
    lmax = jnp.max(logits, axis=1, keepdims=True)
    lse = jnp.log(jnp.sum(jnp.exp(logits - lmax), axis=1, keepdims=True)) + lmax
    out_ref[0] = (logits - lse).astype(out_ref.dtype)

    # ---- write the final hidden state once, at the last step ----
    @pl.when(t == T - 1)
    def _():
        hidden_ref[...] = h_scratch[...]


# ------------------------------- full forward --------------------------------
def _const_spec(shape):
    zeros = (0,) * len(shape)
    return pl.BlockSpec(shape, lambda t, _z=zeros: _z)


def decoder_forward(params, inputs, encoder_hiddens, encoder_final_hidden):
    """Mirrors Decoder.forward (GRU, 2 layers, bias=False, dropout=0, attention=True).

    inputs: (B,) int32  -> single step, returns (log_probs (B, V), hidden (L, B, H))
            (T, B) int32 -> T fused teacher-forced steps in one pallas_call,
                            returns (log_probs (T, B, V), hidden (L, B, H))
    """
    single_step = inputs.ndim == 1
    ids = inputs[None, :] if single_step else inputs                  # (T, B)
    T, B = ids.shape
    L, _, H = encoder_final_hidden.shape
    S = encoder_hiddens.shape[1]
    V, E = params["emb"].shape
    G = params["w_ih_l0"].shape[1] // 3
    ids = ids.reshape(T, B, 1).astype(jnp.int32)

    call_args = (ids, params["emb"], encoder_hiddens, encoder_final_hidden,
                 params["w_ih_l0"], params["w_hh_l0"],
                 params["w_ih_l1"], params["w_hh_l1"],
                 params["w_out_ctx"], params["w_out_h"], params["b_out"])

    # Advisory cost hint for the XLA scheduler.
    flops = T * 2 * B * (V * E + 3 * G * (E + 3 * H) + 2 * S * H + 2 * H * V)
    transc = T * B * (6 * G + S + V)
    bytes_acc = (sum(int(a.size) * a.dtype.itemsize for a in call_args)
                 + T * B * V * 4 + L * B * H * 4)

    out, hidden = pl.pallas_call(
        decoder_kernel,
        out_shape=(jax.ShapeDtypeStruct((T, B, V), jnp.float32),
                   jax.ShapeDtypeStruct((L, B, H), jnp.float32)),
        grid=(T,),
        in_specs=[
            pl.BlockSpec((1, B, 1), lambda t: (t, 0, 0)),             # ids: per-step
            _const_spec((V, E)),                                      # emb: resident
            _const_spec((B, S, H)),                                   # encoder hiddens
            _const_spec((L, B, H)),                                   # encoder final h
            _const_spec(params["w_ih_l0"].shape),
            _const_spec(params["w_hh_l0"].shape),
            _const_spec(params["w_ih_l1"].shape),
            _const_spec(params["w_hh_l1"].shape),
            _const_spec(params["w_out_ctx"].shape),
            _const_spec(params["w_out_h"].shape),
            _const_spec(params["b_out"].shape),
        ],
        out_specs=(pl.BlockSpec((1, B, V), lambda t: (t, 0, 0)),      # per-step logprobs
                   pl.BlockSpec((L, B, H), lambda t: (0, 0, 0))),     # final hidden
        scratch_shapes=[pltpu.VMEM((L, B, H), jnp.float32)],          # hidden carry
        compiler_params=pltpu.CompilerParams(
            dimension_semantics=("arbitrary",)),                      # serial carry on T
        cost_estimate=pl.CostEstimate(flops=flops, transcendentals=transc,
                                      bytes_accessed=bytes_acc),
    )(*call_args)

    if single_step:
        return out[0], hidden
    return out, hidden


# ----------------------------- parameter init --------------------------------
def init_params(key, vocab_size, emb_size, hidden_size):
    H = hidden_size
    G = ((H + 127) // 128) * 128          # 128-lane-aligned gate stride
    ks = jax.random.split(key, 6)
    scale = 0.1

    emb = scale * jax.random.normal(ks[0], (vocab_size, emb_size), jnp.float32)
    emb = emb.at[0].set(0.0)              # padding_idx=0

    def gru_weights(k, in_size):
        k1, k2 = jax.random.split(k)
        # pre-transposed per-matrix weights, gate order (r, z, n), no biases (spec).
        w_ih = scale * jax.random.normal(k1, (in_size, 3 * H), jnp.float32)
        w_hh = scale * jax.random.normal(k2, (H, 3 * H), jnp.float32)

        def pad_gates(w):
            wp = jnp.zeros((w.shape[0], 3 * G), jnp.float32)
            for g in range(3):
                wp = wp.at[:, g * G:g * G + H].set(w[:, g * H:(g + 1) * H])
            return wp.astype(jnp.bfloat16)

        return pad_gates(w_ih), pad_gates(w_hh)

    w_ih_l0, w_hh_l0 = gru_weights(ks[1], emb_size)
    w_ih_l1, w_hh_l1 = gru_weights(ks[2], H)

    # output Linear weight split along its input dim: rows for [attention ctx ; hidden]
    w_out_ctx = scale * jax.random.normal(ks[3], (H, vocab_size), jnp.float32)
    w_out_h = scale * jax.random.normal(ks[4], (H, vocab_size), jnp.float32)
    b_out = scale * jax.random.normal(ks[5], (1, vocab_size), jnp.float32)

    return {
        "emb": emb.astype(jnp.bfloat16),
        "w_ih_l0": w_ih_l0, "w_hh_l0": w_hh_l0,
        "w_ih_l1": w_ih_l1, "w_hh_l1": w_hh_l1,
        "w_out_ctx": w_out_ctx.astype(jnp.bfloat16),
        "w_out_h": w_out_h.astype(jnp.bfloat16),
        "b_out": b_out,
    }


if __name__ == "__main__":
    vocab_size, emb_size, hidden_size = 128, 32, 32
    num_layers, batch, seq, steps = 2, 4, 8, 8

    key = jax.random.PRNGKey(0)
    k_params, k_in, k_enc, k_fin = jax.random.split(key, 4)

    params = init_params(k_params, vocab_size, emb_size, hidden_size)

    token_seq = jax.random.randint(k_in, (steps, batch), 0, vocab_size, dtype=jnp.int32)
    encoder_hiddens = jax.random.normal(k_enc, (batch, seq, hidden_size), jnp.float32)
    encoder_final_hidden = jax.random.normal(
        k_fin, (num_layers, batch, hidden_size), jnp.float32)

    fwd = jax.jit(decoder_forward)

    # --- single step: exact Decoder.forward semantics (T = 1) ---
    out1, hid1 = fwd(params, token_seq[0], encoder_hiddens, encoder_final_hidden)
    jax.block_until_ready((out1, hid1))
    assert out1.shape == (batch, vocab_size)
    assert hid1.shape == (num_layers, batch, hidden_size)
    assert bool(jnp.all(jnp.abs(jnp.sum(jnp.exp(out1), axis=1) - 1.0) < 1e-4))

    # --- fused multi-step decode: T steps in one pallas_call, weights VMEM-resident ---
    out_seq, hid_seq = fwd(params, token_seq, encoder_hiddens, encoder_final_hidden)
    jax.block_until_ready((out_seq, hid_seq))
    assert out_seq.shape == (steps, batch, vocab_size)
    assert hid_seq.shape == (num_layers, batch, hidden_size)
    # step 0 of the fused decode must match the standalone single-step call
    assert bool(jnp.allclose(out_seq[0], out1, atol=1e-4, rtol=1e-4))
    # every step's log_softmax rows should sum to ~1 in prob space
    assert bool(jnp.all(jnp.abs(jnp.sum(jnp.exp(out_seq), axis=2) - 1.0) < 1e-4))

    print("KERNEL_OK")
</pallas_src>

<mosaic_0001>
module attributes {stable_mosaic.version = 11 : i64} {
  func.func @decoder_kernel(%arg0: i32, %arg1: memref<1x4x1xi32, #tpu.memory_space<vmem>>, %arg2: memref<128x32xbf16, #tpu.memory_space<vmem>>, %arg3: memref<4x8x32xf32, #tpu.memory_space<vmem>>, %arg4: memref<2x4x32xf32, #tpu.memory_space<vmem>>, %arg5: memref<32x384xbf16, #tpu.memory_space<vmem>>, %arg6: memref<32x384xbf16, #tpu.memory_space<vmem>>, %arg7: memref<32x384xbf16, #tpu.memory_space<vmem>>, %arg8: memref<32x384xbf16, #tpu.memory_space<vmem>>, %arg9: memref<32x128xbf16, #tpu.memory_space<vmem>>, %arg10: memref<32x128xbf16, #tpu.memory_space<vmem>>, %arg11: memref<1x128xf32, #tpu.memory_space<vmem>>, %arg12: memref<1x4x128xf32, #tpu.memory_space<vmem>>, %arg13: memref<2x4x32xf32, #tpu.memory_space<vmem>>, %arg14: memref<2x4x32xf32, #tpu.memory_space<vmem>>) attributes {dimension_semantics = [#tpu.dimension_semantics<arbitrary>], iteration_bounds = array<i64: 1>, scalar_prefetch = 0 : i64, scratch_operands = 1 : i64, tpu.core_type = #tpu.core_type<tc>, window_params = [{transform_indices = @transform_0, window_bounds = array<i64: 1, 4, 1>}, {pipeline_mode = #tpu.pipeline_mode<synchronous>, transform_indices = @transform_1, window_bounds = array<i64: 128, 32>}, {pipeline_mode = #tpu.pipeline_mode<synchronous>, transform_indices = @transform_2, window_bounds = array<i64: 4, 8, 32>}, {pipeline_mode = #tpu.pipeline_mode<synchronous>, transform_indices = @transform_3, window_bounds = array<i64: 2, 4, 32>}, {pipeline_mode = #tpu.pipeline_mode<synchronous>, transform_indices = @transform_4, window_bounds = array<i64: 32, 384>}, {pipeline_mode = #tpu.pipeline_mode<synchronous>, transform_indices = @transform_5, window_bounds = array<i64: 32, 384>}, {pipeline_mode = #tpu.pipeline_mode<synchronous>, transform_indices = @transform_6, window_bounds = array<i64: 32, 384>}, {pipeline_mode = #tpu.pipeline_mode<synchronous>, transform_indices = @transform_7, window_bounds = array<i64: 32, 384>}, {pipeline_mode = #tpu.pipeline_mode<synchronous>, transform_indices = @transform_8, window_bounds = array<i64: 32, 128>}, {pipeline_mode = #tpu.pipeline_mode<synchronous>, transform_indices = @transform_9, window_bounds = array<i64: 32, 128>}, {pipeline_mode = #tpu.pipeline_mode<synchronous>, transform_indices = @transform_10, window_bounds = array<i64: 1, 128>}, {transform_indices = @transform_11, window_bounds = array<i64: 1, 4, 128>}, {pipeline_mode = #tpu.pipeline_mode<synchronous>, transform_indices = @transform_12, window_bounds = array<i64: 2, 4, 32>}]} {
    %c0_i32 = arith.constant 0 : i32
    %0 = arith.cmpi eq, %arg0, %c0_i32 : i32
    %1 = arith.extui %0 : i1 to i32
    %c0_i32_0 = arith.constant 0 : i32
    %2 = arith.cmpi ne, %1, %c0_i32_0 : i32
    scf.if %2 {
      %c0_56 = arith.constant 0 : index
      %c0_57 = arith.constant 0 : index
      %c0_58 = arith.constant 0 : index
      %139 = vector.load %arg4[%c0_56, %c0_57, %c0_58] : memref<2x4x32xf32, #tpu.memory_space<vmem>>, vector<2x4x32xf32>
      %c0_59 = arith.constant 0 : index
      %c0_60 = arith.constant 0 : index
      %c0_61 = arith.constant 0 : index
      %140 = vector.load %arg14[%c0_59, %c0_60, %c0_61] : memref<2x4x32xf32, #tpu.memory_space<vmem>>, vector<2x4x32xf32>
      tpu.vector_store %arg14[%c0_59, %c0_60, %c0_61], %139 {strides = array<i32>} : memref<2x4x32xf32, #tpu.memory_space<vmem>>, vector<2x4x32xf32>,
    } else {
    }
    %c0 = arith.constant 0 : index
    %c0_1 = arith.constant 0 : index
    %c0_2 = arith.constant 0 : index
    %3 = vector.load %arg1[%c0, %c0_1, %c0_2] : memref<1x4x1xi32, #tpu.memory_space<vmem>>, vector<1x4x1xi32>
    %4 = vector.shape_cast %3 : vector<1x4x1xi32> to vector<4x1xi32>
    %5 = tpu.iota {dimensions = array<i32: 1>} : vector<4x128xi32>
    %6 = vector.broadcast %4 : vector<4x1xi32> to vector<4x128xi32>
    %7 = arith.cmpi eq, %5, %6 : vector<4x128xi32>
    %8 = arith.extui %7 : vector<4x128xi1> to vector<4x128xi32>
    %9 = arith.sitofp %8 : vector<4x128xi32> to vector<4x128xf32>
    %10 = arith.truncf %9 : vector<4x128xf32> to vector<4x128xbf16>
    %c0_3 = arith.constant 0 : index
    %c0_4 = arith.constant 0 : index
    %11 = vector.load %arg2[%c0_3, %c0_4] : memref<128x32xbf16, #tpu.memory_space<vmem>>, vector<128x32xbf16>
    %cst = arith.constant dense<0.000000e+00> : vector<4x32xf32>
    %12 = tpu.matmul %10, %11, %cst {dimension_numbers = #tpu.dot_dimension_numbers<[1], [0], [0], [1], [0, 0, 1, 1], [], []>} : vector<4x128xbf16>, vector<128x32xbf16>, vector<4x32xf32> -> vector<4x32xf32>
    %c0_5 = arith.constant 0 : index
    %c0_6 = arith.constant 0 : index
    %c0_7 = arith.constant 0 : index
    %13 = vector.load %arg14[%c0_5, %c0_6, %c0_7] : memref<2x4x32xf32, #tpu.memory_space<vmem>>, vector<1x4x32xf32>
    %14 = vector.shape_cast %13 : vector<1x4x32xf32> to vector<4x32xf32>
    %15 = arith.truncf %12 : vector<4x32xf32> to vector<4x32xbf16>
    %c0_8 = arith.constant 0 : index
    %c0_9 = arith.constant 0 : index
    %16 = vector.load %arg5[%c0_8, %c0_9] : memref<32x384xbf16, #tpu.memory_space<vmem>>, vector<32x384xbf16>
    %cst_10 = arith.constant dense<0.000000e+00> : vector<4x384xf32>
    %17 = tpu.matmul %15, %16, %cst_10 {dimension_numbers = #tpu.dot_dimension_numbers<[1], [0], [0], [1], [0, 0, 1, 1], [], []>} : vector<4x32xbf16>, vector<32x384xbf16>, vector<4x384xf32> -> vector<4x384xf32>
    %18 = arith.truncf %14 : vector<4x32xf32> to vector<4x32xbf16>
    %c0_11 = arith.constant 0 : index
    %c0_12 = arith.constant 0 : index
    %19 = vector.load %arg6[%c0_11, %c0_12] : memref<32x384xbf16, #tpu.memory_space<vmem>>, vector<32x384xbf16>
    %cst_13 = arith.constant dense<0.000000e+00> : vector<4x384xf32>
    %20 = tpu.matmul %18, %19, %cst_13 {dimension_numbers = #tpu.dot_dimension_numbers<[1], [0], [0], [1], [0, 0, 1, 1], [], []>} : vector<4x32xbf16>, vector<32x384xbf16>, vector<4x384xf32> -> vector<4x384xf32>
    %21 = vector.extract_strided_slice %17 {offsets = [0, 0], sizes = [4, 128], strides = [1, 1]} : vector<4x384xf32> to vector<4x128xf32>
    %22 = vector.extract_strided_slice %20 {offsets = [0, 0], sizes = [4, 128], strides = [1, 1]} : vector<4x384xf32> to vector<4x128xf32>
    %23 = arith.addf %21, %22 : vector<4x128xf32>
    %24 = arith.negf %23 : vector<4x128xf32>
    %25 = math.exp %24 : vector<4x128xf32>
    %cst_14 = arith.constant 1.000000e+00 : f32
    %26 = vector.broadcast %cst_14 : f32 to vector<4x128xf32>
    %27 = arith.addf %26, %25 : vector<4x128xf32>
    %28 = arith.divf %26, %27 : vector<4x128xf32>
    %29 = vector.extract_strided_slice %17 {offsets = [0, 128], sizes = [4, 128], strides = [1, 1]} : vector<4x384xf32> to vector<4x128xf32>
    %30 = vector.extract_strided_slice %20 {offsets = [0, 128], sizes = [4, 128], strides = [1, 1]} : vector<4x384xf32> to vector<4x128xf32>
    %31 = arith.addf %29, %30 : vector<4x128xf32>
    %32 = arith.negf %31 : vector<4x128xf32>
    %33 = math.exp %32 : vector<4x128xf32>
    %cst_15 = arith.constant 1.000000e+00 : f32
    %34 = vector.broadcast %cst_15 : f32 to vector<4x128xf32>
    %35 = arith.addf %34, %33 : vector<4x128xf32>
    %36 = arith.divf %34, %35 : vector<4x128xf32>
    %37 = vector.extract_strided_slice %17 {offsets = [0, 256], sizes = [4, 128], strides = [1, 1]} : vector<4x384xf32> to vector<4x128xf32>
    %38 = vector.extract_strided_slice %20 {offsets = [0, 256], sizes = [4, 128], strides = [1, 1]} : vector<4x384xf32> to vector<4x128xf32>
    %39 = arith.mulf %28, %38 : vector<4x128xf32>
    %40 = arith.addf %37, %39 : vector<4x128xf32>
    %41 = math.tanh %40 : vector<4x128xf32>
    %42 = vector.extract_strided_slice %36 {offsets = [0, 0], sizes = [4, 32], strides = [1, 1]} : vector<4x128xf32> to vector<4x32xf32>
    %cst_16 = arith.constant 1.000000e+00 : f32
    %43 = vector.broadcast %cst_16 : f32 to vector<4x32xf32>
    %44 = arith.subf %43, %42 : vector<4x32xf32>
    %45 = vector.extract_strided_slice %41 {offsets = [0, 0], sizes = [4, 32], strides = [1, 1]} : vector<4x128xf32> to vector<4x32xf32>
    %46 = arith.mulf %44, %45 : vector<4x32xf32>
    %47 = vector.extract_strided_slice %36 {offsets = [0, 0], sizes = [4, 32], strides = [1, 1]} : vector<4x128xf32> to vector<4x32xf32>
    %48 = arith.mulf %47, %14 : vector<4x32xf32>
    %49 = arith.addf %46, %48 : vector<4x32xf32>
    %c1 = arith.constant 1 : index
    %c0_17 = arith.constant 0 : index
    %c0_18 = arith.constant 0 : index
    %50 = vector.load %arg14[%c1, %c0_17, %c0_18] : memref<2x4x32xf32, #tpu.memory_space<vmem>>, vector<1x4x32xf32>
    %51 = vector.shape_cast %50 : vector<1x4x32xf32> to vector<4x32xf32>
    %52 = arith.truncf %49 : vector<4x32xf32> to vector<4x32xbf16>
    %c0_19 = arith.constant 0 : index
    %c0_20 = arith.constant 0 : index
    %53 = vector.load %arg7[%c0_19, %c0_20] : memref<32x384xbf16, #tpu.memory_space<vmem>>, vector<32x384xbf16>
    %cst_21 = arith.constant dense<0.000000e+00> : vector<4x384xf32>
    %54 = tpu.matmul %52, %53, %cst_21 {dimension_numbers = #tpu.dot_dimension_numbers<[1], [0], [0], [1], [0, 0, 1, 1], [], []>} : vector<4x32xbf16>, vector<32x384xbf16>, vector<4x384xf32> -> vector<4x384xf32>
    %55 = arith.truncf %51 : vector<4x32xf32> to vector<4x32xbf16>
    %c0_22 = arith.constant 0 : index
    %c0_23 = arith.constant 0 : index
    %56 = vector.load %arg8[%c0_22, %c0_23] : memref<32x384xbf16, #tpu.memory_space<vmem>>, vector<32x384xbf16>
    %cst_24 = arith.constant dense<0.000000e+00> : vector<4x384xf32>
    %57 = tpu.matmul %55, %56, %cst_24 {dimension_numbers = #tpu.dot_dimension_numbers<[1], [0], [0], [1], [0, 0, 1, 1], [], []>} : vector<4x32xbf16>, vector<32x384xbf16>, vector<4x384xf32> -> vector<4x384xf32>
    %58 = vector.extract_strided_slice %54 {offsets = [0, 0], sizes = [4, 128], strides = [1, 1]} : vector<4x384xf32> to vector<4x128xf32>
    %59 = vector.extract_strided_slice %57 {offsets = [0, 0], sizes = [4, 128], strides = [1, 1]} : vector<4x384xf32> to vector<4x128xf32>
    %60 = arith.addf %58, %59 : vector<4x128xf32>
    %61 = arith.negf %60 : vector<4x128xf32>
    %62 = math.exp %61 : vector<4x128xf32>
    %cst_25 = arith.constant 1.000000e+00 : f32
    %63 = vector.broadcast %cst_25 : f32 to vector<4x128xf32>
    %64 = arith.addf %63, %62 : vector<4x128xf32>
    %65 = arith.divf %63, %64 : vector<4x128xf32>
    %66 = vector.extract_strided_slice %54 {offsets = [0, 128], sizes = [4, 128], strides = [1, 1]} : vector<4x384xf32> to vector<4x128xf32>
    %67 = vector.extract_strided_slice %57 {offsets = [0, 128], sizes = [4, 128], strides = [1, 1]} : vector<4x384xf32> to vector<4x128xf32>
    %68 = arith.addf %66, %67 : vector<4x128xf32>
    %69 = arith.negf %68 : vector<4x128xf32>
    %70 = math.exp %69 : vector<4x128xf32>
    %cst_26 = arith.constant 1.000000e+00 : f32
    %71 = vector.broadcast %cst_26 : f32 to vector<4x128xf32>
    %72 = arith.addf %71, %70 : vector<4x128xf32>
    %73 = arith.divf %71, %72 : vector<4x128xf32>
    %74 = vector.extract_strided_slice %54 {offsets = [0, 256], sizes = [4, 128], strides = [1, 1]} : vector<4x384xf32> to vector<4x128xf32>
    %75 = vector.extract_strided_slice %57 {offsets = [0, 256], sizes = [4, 128], strides = [1, 1]} : vector<4x384xf32> to vector<4x128xf32>
    %76 = arith.mulf %65, %75 : vector<4x128xf32>
    %77 = arith.addf %74, %76 : vector<4x128xf32>
    %78 = math.tanh %77 : vector<4x128xf32>
    %79 = vector.extract_strided_slice %73 {offsets = [0, 0], sizes = [4, 32], strides = [1, 1]} : vector<4x128xf32> to vector<4x32xf32>
    %cst_27 = arith.constant 1.000000e+00 : f32
    %80 = vector.broadcast %cst_27 : f32 to vector<4x32xf32>
    %81 = arith.subf %80, %79 : vector<4x32xf32>
    %82 = vector.extract_strided_slice %78 {offsets = [0, 0], sizes = [4, 32], strides = [1, 1]} : vector<4x128xf32> to vector<4x32xf32>
    %83 = arith.mulf %81, %82 : vector<4x32xf32>
    %84 = vector.extract_strided_slice %73 {offsets = [0, 0], sizes = [4, 32], strides = [1, 1]} : vector<4x128xf32> to vector<4x32xf32>
    %85 = arith.mulf %84, %51 : vector<4x32xf32>
    %86 = arith.addf %83, %85 : vector<4x32xf32>
    %c0_28 = arith.constant 0 : index
    %c0_29 = arith.constant 0 : index
    %c0_30 = arith.constant 0 : index
    %87 = vector.load %arg14[%c0_28, %c0_29, %c0_30] : memref<2x4x32xf32, #tpu.memory_space<vmem>>, vector<1x4x32xf32>
    %88 = vector.shape_cast %87 : vector<1x4x32xf32> to vector<4x32xf32>
    %89 = vector.shape_cast %49 : vector<4x32xf32> to vector<1x4x32xf32>
    tpu.vector_store %arg14[%c0_28, %c0_29, %c0_30], %89 {strides = array<i32>} : memref<2x4x32xf32, #tpu.memory_space<vmem>>, vector<1x4x32xf32>,
    %c1_31 = arith.constant 1 : index
    %c0_32 = arith.constant 0 : index
    %c0_33 = arith.constant 0 : index
    %90 = vector.load %arg14[%c1_31, %c0_32, %c0_33] : memref<2x4x32xf32, #tpu.memory_space<vmem>>, vector<1x4x32xf32>
    %91 = vector.shape_cast %90 : vector<1x4x32xf32> to vector<4x32xf32>
    %92 = vector.shape_cast %86 : vector<4x32xf32> to vector<1x4x32xf32>
    tpu.vector_store %arg14[%c1_31, %c0_32, %c0_33], %92 {strides = array<i32>} : memref<2x4x32xf32, #tpu.memory_space<vmem>>, vector<1x4x32xf32>,
    %c0_34 = arith.constant 0 : index
    %c0_35 = arith.constant 0 : index
    %c0_36 = arith.constant 0 : index
    %93 = vector.load %arg3[%c0_34, %c0_35, %c0_36] : memref<4x8x32xf32, #tpu.memory_space<vmem>>, vector<4x8x32xf32>
    %94 = vector.shape_cast %86 : vector<4x32xf32> to vector<4x1x32xf32>
    %95 = vector.broadcast %94 : vector<4x1x32xf32> to vector<4x8x32xf32>
    %96 = arith.mulf %93, %95 : vector<4x8x32xf32>
    %cst_37 = arith.constant dense<0.000000e+00> : vector<4x8xf32>
    %97 = vector.multi_reduction <add>, %96, %cst_37 [2] : vector<4x8x32xf32> to vector<4x8xf32>
    %cst_38 = arith.constant dense<0xFF800000> : vector<4xf32>
    %98 = vector.multi_reduction <maximumf>, %97, %cst_38 [1] : vector<4x8xf32> to vector<4xf32>
    %99 = vector.shape_cast %98 : vector<4xf32> to vector<4x1xf32>
    %100 = vector.broadcast %99 : vector<4x1xf32> to vector<4x8xf32>
    %101 = arith.subf %97, %100 : vector<4x8xf32>
    %102 = math.exp %101 : vector<4x8xf32>
    %cst_39 = arith.constant dense<0.000000e+00> : vector<4xf32>
    %103 = vector.multi_reduction <add>, %102, %cst_39 [1] : vector<4x8xf32> to vector<4xf32>
    %104 = vector.shape_cast %103 : vector<4xf32> to vector<4x1xf32>
    %105 = tpu.reciprocal %104 {approx = true} : vector<4x1xf32> -> vector<4x1xf32>
    %106 = vector.broadcast %105 : vector<4x1xf32> to vector<4x8xf32>
    %107 = arith.mulf %102, %106 : vector<4x8xf32>
    %108 = vector.shape_cast %107 : vector<4x8xf32> to vector<4x8x1xf32>
    %109 = vector.broadcast %108 : vector<4x8x1xf32> to vector<4x8x32xf32>
    %110 = arith.mulf %93, %109 : vector<4x8x32xf32>
    %cst_40 = arith.constant dense<0.000000e+00> : vector<4x32xf32>
    %111 = vector.multi_reduction <add>, %110, %cst_40 [1] : vector<4x8x32xf32> to vector<4x32xf32>
    %112 = arith.truncf %111 : vector<4x32xf32> to vector<4x32xbf16>
    %c0_41 = arith.constant 0 : index
    %c0_42 = arith.constant 0 : index
    %113 = vector.load %arg9[%c0_41, %c0_42] : memref<32x128xbf16, #tpu.memory_space<vmem>>, vector<32x128xbf16>
    %cst_43 = arith.constant dense<0.000000e+00> : vector<4x128xf32>
    %114 = tpu.matmul %112, %113, %cst_43 {dimension_numbers = #tpu.dot_dimension_numbers<[1], [0], [0], [1], [0, 0, 1, 1], [], []>} : vector<4x32xbf16>, vector<32x128xbf16>, vector<4x128xf32> -> vector<4x128xf32>
    %115 = arith.truncf %86 : vector<4x32xf32> to vector<4x32xbf16>
    %c0_44 = arith.constant 0 : index
    %c0_45 = arith.constant 0 : index
    %116 = vector.load %arg10[%c0_44, %c0_45] : memref<32x128xbf16, #tpu.memory_space<vmem>>, vector<32x128xbf16>
    %cst_46 = arith.constant dense<0.000000e+00> : vector<4x128xf32>
    %117 = tpu.matmul %115, %116, %cst_46 {dimension_numbers = #tpu.dot_dimension_numbers<[1], [0], [0], [1], [0, 0, 1, 1], [], []>} : vector<4x32xbf16>, vector<32x128xbf16>, vector<4x128xf32> -> vector<4x128xf32>
    %118 = arith.addf %114, %117 : vector<4x128xf32>
    %c0_47 = arith.constant 0 : index
    %c0_48 = arith.constant 0 : index
    %119 = vector.load %arg11[%c0_47, %c0_48] : memref<1x128xf32, #tpu.memory_space<vmem>>, vector<1x128xf32>
    %120 = vector.broadcast %119 : vector<1x128xf32> to vector<4x128xf32>
    %121 = arith.addf %118, %120 : vector<4x128xf32>
    %cst_49 = arith.constant dense<0xFF800000> : vector<4xf32>
    %122 = vector.multi_reduction <maximumf>, %121, %cst_49 [1] : vector<4x128xf32> to vector<4xf32>
    %123 = vector.shape_cast %122 : vector<4xf32> to vector<4x1xf32>
    %124 = vector.broadcast %123 : vector<4x1xf32> to vector<4x128xf32>
    %125 = arith.subf %121, %124 : vector<4x128xf32>
    %126 = math.exp %125 : vector<4x128xf32>
    %cst_50 = arith.constant dense<0.000000e+00> : vector<4xf32>
    %127 = vector.multi_reduction <add>, %126, %cst_50 [1] : vector<4x128xf32> to vector<4xf32>
    %128 = vector.shape_cast %127 : vector<4xf32> to vector<4x1xf32>
    %129 = math.log %128 : vector<4x1xf32>
    %130 = arith.addf %129, %123 : vector<4x1xf32>
    %131 = vector.broadcast %130 : vector<4x1xf32> to vector<4x128xf32>
    %132 = arith.subf %121, %131 : vector<4x128xf32>
    %c0_51 = arith.constant 0 : index
    %c0_52 = arith.constant 0 : index
    %c0_53 = arith.constant 0 : index
    %133 = vector.load %arg12[%c0_51, %c0_52, %c0_53] : memref<1x4x128xf32, #tpu.memory_space<vmem>>, vector<1x4x128xf32>
    %134 = vector.shape_cast %133 : vector<1x4x128xf32> to vector<4x128xf32>
    %135 = vector.shape_cast %132 : vector<4x128xf32> to vector<1x4x128xf32>
    tpu.vector_store %arg12[%c0_51, %c0_52, %c0_53], %135 {strides = array<i32>} : memref<1x4x128xf32, #tpu.memory_space<vmem>>, vector<1x4x128xf32>,
    %c0_i32_54 = arith.constant 0 : i32
    %136 = arith.cmpi eq, %arg0, %c0_i32_54 : i32
    %137 = arith.extui %136 : i1 to i32
    %c0_i32_55 = arith.constant 0 : i32
    %138 = arith.cmpi ne, %137, %c0_i32_55 : i32
    scf.if %138 {
      %c0_56 = arith.constant 0 : index
      %c0_57 = arith.constant 0 : index
      %c0_58 = arith.constant 0 : index
      %139 = vector.load %arg14[%c0_56, %c0_57, %c0_58] : memref<2x4x32xf32, #tpu.memory_space<vmem>>, vector<2x4x32xf32>
      %c0_59 = arith.constant 0 : index
      %c0_60 = arith.constant 0 : index
      %c0_61 = arith.constant 0 : index
      %140 = vector.load %arg13[%c0_59, %c0_60, %c0_61] : memref<2x4x32xf32, #tpu.memory_space<vmem>>, vector<2x4x32xf32>
      tpu.vector_store %arg13[%c0_59, %c0_60, %c0_61], %139 {strides = array<i32>} : memref<2x4x32xf32, #tpu.memory_space<vmem>>, vector<2x4x32xf32>,
    } else {
    }
    return
  }
  func.func @transform_0(%arg0: i32) -> (i32, i32, i32) {
    %c0_i32 = arith.constant 0 : i32
    %c0_i32_0 = arith.constant 0 : i32
    %c0_i32_1 = arith.constant 0 : i32
    return %arg0, %c0_i32, %c0_i32_0 : i32, i32, i32
  }
  func.func @transform_1(%arg0: i32) -> (i32, i32) {
    %c0_i32 = arith.constant 0 : i32
    %c0_i32_0 = arith.constant 0 : i32
    %c0_i32_1 = arith.constant 0 : i32
    return %c0_i32, %c0_i32_0 : i32, i32
  }
  func.func @transform_2(%arg0: i32) -> (i32, i32, i32) {
    %c0_i32 = arith.constant 0 : i32
    %c0_i32_0 = arith.constant 0 : i32
    %c0_i32_1 = arith.constant 0 : i32
    %c0_i32_2 = arith.constant 0 : i32
    return %c0_i32, %c0_i32_0, %c0_i32_1 : i32, i32, i32
  }
  func.func @transform_3(%arg0: i32) -> (i32, i32, i32) {
    %c0_i32 = arith.constant 0 : i32
    %c0_i32_0 = arith.constant 0 : i32
    %c0_i32_1 = arith.constant 0 : i32
    %c0_i32_2 = arith.constant 0 : i32
    return %c0_i32, %c0_i32_0, %c0_i32_1 : i32, i32, i32
  }
  func.func @transform_4(%arg0: i32) -> (i32, i32) {
    %c0_i32 = arith.constant 0 : i32
    %c0_i32_0 = arith.constant 0 : i32
    %c0_i32_1 = arith.constant 0 : i32
    return %c0_i32, %c0_i32_0 : i32, i32
  }
  func.func @transform_5(%arg0: i32) -> (i32, i32) {
    %c0_i32 = arith.constant 0 : i32
    %c0_i32_0 = arith.constant 0 : i32
    %c0_i32_1 = arith.constant 0 : i32
    return %c0_i32, %c0_i32_0 : i32, i32
  }
  func.func @transform_6(%arg0: i32) -> (i32, i32) {
    %c0_i32 = arith.constant 0 : i32
    %c0_i32_0 = arith.constant 0 : i32
    %c0_i32_1 = arith.constant 0 : i32
    return %c0_i32, %c0_i32_0 : i32, i32
  }
  func.func @transform_7(%arg0: i32) -> (i32, i32) {
    %c0_i32 = arith.constant 0 : i32
    %c0_i32_0 = arith.constant 0 : i32
    %c0_i32_1 = arith.constant 0 : i32
    return %c0_i32, %c0_i32_0 : i32, i32
  }
  func.func @transform_8(%arg0: i32) -> (i32, i32) {
    %c0_i32 = arith.constant 0 : i32
    %c0_i32_0 = arith.constant 0 : i32
    %c0_i32_1 = arith.constant 0 : i32
    return %c0_i32, %c0_i32_0 : i32, i32
  }
  func.func @transform_9(%arg0: i32) -> (i32, i32) {
    %c0_i32 = arith.constant 0 : i32
    %c0_i32_0 = arith.constant 0 : i32
    %c0_i32_1 = arith.constant 0 : i32
    return %c0_i32, %c0_i32_0 : i32, i32
  }
  func.func @transform_10(%arg0: i32) -> (i32, i32) {
    %c0_i32 = arith.constant 0 : i32
    %c0_i32_0 = arith.constant 0 : i32
    %c0_i32_1 = arith.constant 0 : i32
    return %c0_i32, %c0_i32_0 : i32, i32
  }
  func.func @transform_11(%arg0: i32) -> (i32, i32, i32) {
    %c0_i32 = arith.constant 0 : i32
    %c0_i32_0 = arith.constant 0 : i32
    %c0_i32_1 = arith.constant 0 : i32
    return %arg0, %c0_i32, %c0_i32_0 : i32, i32, i32
  }
  func.func @transform_12(%arg0: i32) -> (i32, i32, i32) {
    %c0_i32 = arith.constant 0 : i32
    %c0_i32_0 = arith.constant 0 : i32
    %c0_i32_1 = arith.constant 0 : i32
    %c0_i32_2 = arith.constant 0 : i32
    return %c0_i32, %c0_i32_0, %c0_i32_1 : i32, i32, i32
  }
}

</mosaic_0001>

<bundles_post_ra>
// kernel: decoder_forward.1
= control target key start
LH: loop header
LB: loop body
LE: loop exit
PB: predicated region body
PF: predicated region fallthrough
CT: control target
= control target key end

     0   :  { %18 = vsyncpa [#allocation4], 0  ;;  %s2014_s0 = inlined_call_operand.vmem [shape: s32[1,4,1], index: 0, kind: input, shape index: {}]   ;;  %s2015_s1 = inlined_call_operand.vmem [shape: bf16[128,32], index: 1, kind: input, shape index: {}]   ;;  %s2016_s2 = inlined_call_operand.hbm [shape: f32[4,8,32], index: 2, kind: input, shape index: {}]   ;;  %s2017_s3 = inlined_call_operand.vmem [shape: f32[2,4,32], index: 3, kind: input, shape index: {}]   ;;  %s2018_s4 = inlined_call_operand.vmem [shape: bf16[32,384], index: 4, kind: input, shape index: {}]   ;;  %s2019_s5 = inlined_call_operand.vmem [shape: bf16[32,384], index: 5, kind: input, shape index: {}]   ;;  %s2020_s6 = inlined_call_operand.hbm [shape: bf16[32,384], index: 6, kind: input, shape index: {}]   ;;  %s2021_s7 = inlined_call_operand.hbm [shape: bf16[32,384], index: 7, kind: input, shape index: {}]   ;;  %s2022_s8 = inlined_call_operand.hbm [shape: bf16[32,128], index: 8, kind: input, shape index: {}]   ;;  %s2023_s9 = inlined_call_operand.vmem [shape: bf16[32,128], index: 9, kind: input, shape index: {}]   ;;  %s2024_s10 = inlined_call_operand.hbm [shape: f32[1,128], index: 10, kind: input, shape index: {}]   ;;  %s2025_s11 = inlined_call_operand.hbm [shape: f32[1,4,128], index: 11, kind: output, shape index: {0}]   ;;  %s2026_s12 = inlined_call_operand.hbm [shape: f32[2,4,32], index: 12, kind: output, shape index: {1}]  }
   0x1   :  { %19 = vsyncpa [#allocation7], 0 }
   0x2   :  { %20 = vsyncpa [#allocation10], 0 }
   0x3   :  { %21 = vsyncpa [#allocation5], 0 }
   0x4   :  { %22 = vsyncpa [#allocation14], 0  ;;  %s1644_s21 = smov [#allocation6]   ;;  %s1480_s25 = scalar_lea.hbm %s2020_s6, 768 }
   0x5   :  { %s50_s22 = sshll.u32 %s1644_s21, 4  ;;  %p1481_p0 = scmp.ne.s32.totalorder %s2020_s6, %s1480_s25  ;;  %s51_s22 = int_to_ptr.vmem [resolvable:$true] %s50_s22 }
   0x6   :  { %p1484_p1 = scmp.lt.u32.totalorder %s1480_s25, %s2020_s6 }
   0x8   :  { %p1486_p2 = pnand %p1484_p1, %p1481_p0 }
   0xa   :  { %1489 = shalt.err (!%p1486_p2)
}
   0xb   :  { %s1490_s30 = scalar_lea.vmem %s51_s22, 768  ;;  %p1495_p4 = scmp.lt.s32.totalorder %s51_s22, %s51_s22 }
   0xc   :  { %p1491_p3 = scmp.ne.s32.totalorder %s51_s22, %s1490_s30  ;;  %p1496_p5 = scmp.lt.s32.totalorder %s1490_s30, %s1490_s30 }
   0xe   :  { %p1497_p6 = por %p1496_p5, %p1495_p4 }
  0x10   :  { %p1498_p7 = pnand %p1497_p6, %p1491_p3 }
  0x12   :  { %1501 = shalt.err (!%p1498_p7)
}
  0x13   :  { %s1645_s13 = smov 192   ;;  %s1646_s14 = smov 12  }
  0x14   :  { %56 = dma.hbm_to_vmem [thread:$0]  %s2020_s6, 768, %s51_s22, [#allocation7], %s1645_s13, %s1645_s13, %s1646_s14  }
  0x15   :  { %s1647_s17 = smov [#allocation9]   ;;  %s1502_s21 = scalar_lea.hbm %s2022_s8, 256 }
  0x16   :  { %s74_s18 = sshll.u32 %s1647_s17, 4  ;;  %p1503_p8 = scmp.ne.s32.totalorder %s2022_s8, %s1502_s21  ;;  %s75_s18 = int_to_ptr.vmem [resolvable:$true] %s74_s18 }
  0x17   :  { %p1506_p9 = scmp.lt.u32.totalorder %s1502_s21, %s2022_s8 }
  0x19   :  { %p1508_p10 = pnand %p1506_p9, %p1503_p8 }
  0x1b   :  { %1511 = shalt.err (!%p1508_p10)
}
  0x1c   :  { %s1512_s27 = scalar_lea.vmem %s75_s18, 256  ;;  %p1517_p12 = scmp.lt.s32.totalorder %s75_s18, %s75_s18 }
  0x1d   :  { %p1513_p11 = scmp.ne.s32.totalorder %s75_s18, %s1512_s27  ;;  %p1518_p13 = scmp.lt.s32.totalorder %s1512_s27, %s1512_s27 }
  0x1f   :  { %p1519_p0 = por %p1518_p13, %p1517_p12 }
  0x21   :  { %p1520_p1 = pnand %p1519_p0, %p1513_p11 }
  0x23   :  { %1523 = shalt.err (!%p1520_p1)
}
  0x24   :  { %s1648_s6 = smov 64   ;;  %s1649_s22 = smov 4  }
  0x25   :  { %80 = dma.hbm_to_vmem [thread:$0]  %s2022_s8, 256, %s75_s18, [#allocation10], %s1648_s6, %s1648_s6, %s1649_s22  }
  0x26   :  { %s1650_s30 = smov [#allocation3]   ;;  %s1524_s19 = scalar_lea.hbm %s2016_s2, 512 }
  0x27   :  { %s32_s15 = sshll.u32 %s1650_s30, 4  ;;  %p1525_p2 = scmp.ne.s32.totalorder %s2016_s2, %s1524_s19  ;;  %s33_s15 = int_to_ptr.vmem [resolvable:$true] %s32_s15 }
  0x28   :  { %p1528_p3 = scmp.lt.u32.totalorder %s1524_s19, %s2016_s2 }
  0x2a   :  { %p1530_p4 = pnand %p1528_p3, %p1525_p2 }
  0x2c   :  { %1533 = shalt.err (!%p1530_p4)
}
  0x2d   :  { %s1534_s25 = scalar_lea.vmem %s33_s15, 512  ;;  %p1539_p6 = scmp.lt.s32.totalorder %s33_s15, %s33_s15 }
  0x2e   :  { %p1535_p5 = scmp.ne.s32.totalorder %s33_s15, %s1534_s25  ;;  %p1540_p7 = scmp.lt.s32.totalorder %s1534_s25, %s1534_s25 }
  0x30   :  { %p1541_p8 = por %p1540_p7, %p1539_p6 }
  0x32   :  { %p1542_p9 = pnand %p1541_p8, %p1535_p5 }
  0x34   :  { %1545 = shalt.err (!%p1542_p9)
}
  0x35   :  { %s1651_s8 = smov 128   ;;  %s1652_s18 = smov 8  }
  0x36   :  { %38 = dma.hbm_to_vmem [thread:$0]  %s2016_s2, 512, %s33_s15, [#allocation4], %s1651_s8, %s1651_s8, %s1652_s18  }
  0x37   :  { %s1653_s28 = smov [#allocation8]   ;;  %s1654_s30 = smov [#allocation11]  }
  0x38   :  { %s62_s29 = sshll.u32 %s1653_s28, 4  ;;  %s89_s16 = sshll.u32 %s1654_s30, 4  ;;  %s63_s29 = int_to_ptr.vmem [resolvable:$true] %s62_s29  ;;  %s90_s16 = int_to_ptr.vmem [resolvable:$true] %s89_s16 }
  0x39   :  { %s1546_s20 = scalar_lea.hbm %s2021_s7, 768 }
  0x3a   :  { %p1547_p10 = scmp.ne.s32.totalorder %s2021_s7, %s1546_s20  ;;  %p1550_p11 = scmp.lt.u32.totalorder %s1546_s20, %s2021_s7 }
  0x3c   :  { %p1552_p12 = pnand %p1550_p11, %p1547_p10 }
  0x3e   :  { %1555 = shalt.err (!%p1552_p12)
}
  0x3f   :  { %s1556_s2 = scalar_lea.vmem %s63_s29, 768  ;;  %p1561_p0 = scmp.lt.s32.totalorder %s63_s29, %s63_s29 }
  0x40   :  { %p1557_p13 = scmp.ne.s32.totalorder %s63_s29, %s1556_s2  ;;  %p1562_p1 = scmp.lt.s32.totalorder %s1556_s2, %s1556_s2 }
  0x42   :  { %p1563_p2 = por %p1562_p1, %p1561_p0 }
  0x44   :  { %p1564_p3 = pnand %p1563_p2, %p1557_p13 }
  0x46   :  { %1567 = shalt.err (!%p1564_p3)
}
  0x47   :  { %68 = dma.hbm_to_vmem [thread:$0]  %s2021_s7, 768, %s63_s29, [#allocation7], %s1645_s13, %s1645_s13, %s1646_s14  }
  0x48   :  { %s1568_s27 = scalar_lea.hbm %s2024_s10, 16 }
  0x49   :  { %p1569_p4 = scmp.ne.s32.totalorder %s2024_s10, %s1568_s27  ;;  %p1572_p5 = scmp.lt.u32.totalorder %s1568_s27, %s2024_s10 }
  0x4b   :  { %p1574_p6 = pnand %p1572_p5, %p1569_p4 }
  0x4d   :  { %1577 = shalt.err (!%p1574_p6)
}
  0x4e   :  { %s1578_s20 = scalar_lea.vmem %s90_s16, 16  ;;  %s1582_s21 = scalar_lea.vmem %s90_s16, 32 }
  0x4f   :  { %p1579_p7 = scmp.ne.s32.totalorder %s90_s16, %s1578_s20  ;;  %p1583_p8 = scmp.lt.s32.totalorder %s90_s16, %s90_s16 }
  0x50   :  { %p1584_p9 = scmp.lt.s32.totalorder %s1582_s21, %s1578_s20 }
  0x52   :  { %p1585_p10 = por %p1584_p9, %p1583_p8 }
  0x54   :  { %p1586_p11 = pnand %p1585_p10, %p1579_p7 }
  0x56   :  { %1589 = shalt.err (!%p1586_p11)
}
  0x57   :  { %92 = dma.hbm_to_vmem [thread:$0]  %s2024_s10, 16, %s90_s16, [#allocation10]  }
  0x58   :  { %1634 = dma.done.wait [#allocation4], 512  }
  0x59   :  { %1635 = vsyncadd [#allocation4], 4294966784 }
  0x5a   :  { %1636 = dma.done.wait [#allocation7], 1536  }
  0x5b   :  { %1637 = vsyncadd [#allocation7], 4294965760 }
  0x5c   :  { %1638 = dma.done.wait [#allocation10], 272  }
  0x5d   :  { %1639 = vsyncadd [#allocation10], 4294967024  ;;  %v1655_v0 = vmov 0   ;;  %v1656_v1 = vmov 0.0   ;;  %v118_v2 = vld [vmem:[%s2014_s0] sm:$0xf]  ;;  %v119_v15 = vlaneseq }
  0x5e   :  { %1400 = vset.pattern.permute.xlu0 %v1655_v0  ;;  %1306 = vmatprep.subr.bf16.mxu0 %v1656_v1  ;;  %v1402_v3 = vld [vmem:[%s2015_s1] sm:$0xff]   ;;  %vm1657_vm0 = vmmov 0   ;;  %v1403_v4 = vld [vmem:[%s2015_s1 + $0x8] sm:$0xff]   ;;  %v1404_v5 = vld [vmem:[%s2015_s1 + $0x10] sm:$0xff]   ;;  %v1658_v18 = vmov 1.0|1.0  }
  0x5f   :  { %310 = vmatprep.mubr.bf16.mxu1 %v1655_v0  ;;  %1401 = vset.pattern.permute.xlu1 %v1655_v0  ;;  %v1405_v6 = vld [vmem:[%s2015_s1 + $0x18] sm:$0xff]   ;;  %v1410_v7 = vld [vmem:[%s2018_s4 + $0x4] ss:$12 sps:$4 sm:$0xff]   ;;  %v1412_v8 = vld [vmem:[%s2018_s4] ss:$12 sps:$4 sm:$0xff]   ;;  %v1850_v16 = vand.u32 127, %v119_v15 }
  0x60   :  { %122 = vperm.xlu0 %1400, %v118_v2   ;;  %1322 = vmatprep.mubr.msk.bf16.mxu0 %vm1657_vm0, %v1656_v1  ;;  %v1413_v9 = vld [vmem:[%s2018_s4 + $0x1c] ss:$12 sps:$4 sm:$0xff]   ;;  %v1415_v10 = vld [vmem:[%s2018_s4 + $0x18] ss:$12 sps:$4 sm:$0xff]   ;;  %v1408_v13 = vld [vmem:[%s2015_s1 + $0x30] sm:$0xff]   ;;  %vm115_vm3 = vcmask 257024  }
  0x61   :  { %1307 = vmatpush3.bf16.msra.mxu0 %v1402_v3  ;;  %278 = vmatprep.subr.bf16.mxu1 %v1410_v7  ;;  %v1406_v11 = vld [vmem:[%s2015_s1 + $0x20] sm:$0xff]   ;;  %v1407_v12 = vld [vmem:[%s2015_s1 + $0x28] sm:$0xff]   ;;  %v1409_v14 = vld [vmem:[%s2015_s1 + $0x38] sm:$0xff]   ;;  %vm274_vm4 = vcmask 261120   ;;  %vm866_vm5 = vcmask 1041409   ;;  %vm868_vm6 = vcmask 1042434  }
  0x62   :  { %1308 = vmatprep.subr.bf16.mxu0 %v1656_v1  ;;  %279 = vmatpush1.bf16.msra.mxu1 %v1412_v8  ;;  %v113_v19 = vld [vmem:[%s2017_s3] sm:$0xf]  ;;  %v1416_v21 = vld [vmem:[%s2018_s4 + $0x8] ss:$12 sps:$4 sm:$0xff]   ;;  %v1420_v27 = vld [vmem:[%s2019_s5 + $0x4] ss:$12 sps:$4 sm:$0xff]  }
  0x63   :  { %280 = vmatprep.subr.bf16.mxu1 %v1413_v9  ;;  %116 = vst.msk [vmem:[#allocation2] sm:$0xf] %vm115_vm3, %v113_v19  ;;  %v1417_v26 = vld [vmem:[%s2018_s4 + $0x20] ss:$12 sps:$4 sm:$0xff]   ;;  %v1423_v29 = vld [vmem:[%s2019_s5 + $0x1c] ss:$12 sps:$4 sm:$0xff]  }
  0x64   :  { %v1418_v28 = vld [vmem:[%s2019_s5] ss:$12 sps:$4 sm:$0xff]   ;;  %v1421_v30 = vld [vmem:[%s2019_s5 + $0x18] ss:$12 sps:$4 sm:$0xff]   ;;  %v1424_v33 = vld [vmem:[%s2019_s5 + $0x8] ss:$12 sps:$4 sm:$0xff]  }
  0x65   :  { %1309 = vmatpush3.bf16.msra.mxu0 %v1403_v4  ;;  %v1425_v34 = vld [vmem:[%s2019_s5 + $0x20] ss:$12 sps:$4 sm:$0xff]   ;;  %v1426_v36 = vld [vmem:[#allocation6] ss:$12 sps:$4 sm:$0xff]   ;;  %v1429_v37 = vld [vmem:[#allocation6 + $0x8] ss:$12 sps:$4 sm:$0xff]  }
  0x66   :  { %1310 = vmatprep.subr.bf16.mxu0 %v1656_v1  ;;  %281 = vmatpush1.bf16.msra.mxu1 %v1415_v10  ;;  %v1428_v35 = vld [vmem:[#allocation6 + $0x4] ss:$12 sps:$4 sm:$0xff]   ;;  %v1432_v39 = vld [vmem:[#allocation6 + $0x1c] ss:$12 sps:$4 sm:$0xff]   ;;  %v1433_v40 = vld [vmem:[#allocation6 + $0x20] ss:$12 sps:$4 sm:$0xff]  }
  0x67   :  { %1326 = vmatprep.subr.bf16.mxu1 %v1656_v1  ;;  %v1430_v38 = vld [vmem:[#allocation6 + $0x18] ss:$12 sps:$4 sm:$0xff]   ;;  %v1436_v41 = vld [vmem:[#allocation8 + $0x4] ss:$12 sps:$4 sm:$0xff]   ;;  %v114_v42 = vld [vmem:[%s2017_s3 + $0x4] sm:$0xf] }
  0x68   :  { %117 = vst.msk [vmem:[#allocation2 + $0x4] sm:$0xf] %vm115_vm3, %v114_v42  ;;  %v1434_v8 = vld [vmem:[#allocation8] ss:$12 sps:$4 sm:$0xff]   ;;  %v1439_v10 = vld [vmem:[#allocation8 + $0x1c] ss:$12 sps:$4 sm:$0xff]  }
  0x69   :  { %1311 = vmatpush3.bf16.msra.mxu0 %v1404_v5  ;;  %v1443_v19 = vld [vmem:[%s2023_s9 + $0x8] sm:$0xff]   ;;  %vm870_vm7 = vcmask 1043459   ;;  %vm873_vm8 = vcmask 60416   ;;  %vm1170_vm9 = vcmask 1043456  }
  0x6a   :  { %1312 = vmatprep.subr.bf16.mxu0 %v1656_v1  ;;  %v232_v31 = vld [vmem:[#allocation2] sm:$0xf] }
  0x6b   :  { %v359_v32 = vpack.c.bf16 %v232_v31, %v232_v31 }
  0x6d   :  { %1313 = vmatpush3.bf16.msra.mxu0 %v1405_v6 }
  0x6e   :  { %1314 = vmatprep.subr.bf16.mxu0 %v1656_v1 }
  0x71   :  { %1315 = vmatpush3.bf16.msra.mxu0 %v1406_v11  ;;  %v1440_v11 = vld [vmem:[#allocation8 + $0x8] ss:$12 sps:$4 sm:$0xff]  }
  0x72   :  { %1316 = vmatprep.subr.bf16.mxu0 %v1656_v1 }
  0x75   :  { %1317 = vmatpush3.bf16.msra.mxu0 %v1407_v12  ;;  %v1437_v12 = vld [vmem:[#allocation8 + $0x18] ss:$12 sps:$4 sm:$0xff]  }
  0x76   :  { %1318 = vmatprep.subr.bf16.mxu0 %v1656_v1 }
  0x79   :  { %1319 = vmatpush3.bf16.msra.mxu0 %v1408_v13  ;;  %v1441_v13 = vld [vmem:[#allocation8 + $0x20] ss:$12 sps:$4 sm:$0xff]  }
  0x7a   :  { %1320 = vmatprep.subr.bf16.mxu0 %v1656_v1 }
  0x7d   :  { %1321 = vmatpush3.bf16.msra.mxu0 %v1409_v14  ;;  %v506_v14 = vld [vmem:[#allocation2 + $0x4] sm:$0xf] }
  0x7e   :  { %551 = vmatprep.subr.bf16.mxu0 %v1428_v35 }
  0xdf   :  { %v123_v17 = vpop.permute.xlu0 %122 }
  0xe0   :  { %vm124_vm1 = vcmp.eq.s32.totalorder %v1850_v16, %v123_v17 }
  0xe1   :  { %vm1234_vm2 = vmpackc.low %vm124_vm1, %vm124_vm1 }
  0xe2   :  { %1323 = vmatmul.mubr.msk.bf16.vlgmr.msra.gmra.mrb[0].mxu0 %vm1234_vm2, %v1658_v18  ;;  %v632_v18 = vpack.c.bf16 %v506_v14, %v506_v14 }
  0xe3   :  { %583 = vmatprep.mubr.bf16.mxu0 %v1655_v0  ;;  %552 = vmatpush1.bf16.msra.mxu0 %v1426_v36 }
  0xe4   :  { %553 = vmatprep.subr.bf16.mxu0 %v1432_v39 }
  0xe7   :  { %554 = vmatpush1.bf16.msra.mxu0 %v1430_v38 }
  0xe8   :  { %676 = vmatprep.subr.bf16.mxu0 %v1436_v41  ;;  %v1659_v41 = vmov 1966171168  }
  0xe9   :  { %v787_v42 = vunpack.c.l.s4 %v1659_v41 }
 0x1b5   :  { %v226_v20 = vpop.f32.mrb[0].mxu0 }
 0x1b6   :  { %v233_v22 = vpack.c.bf16 %v226_v20, %v226_v20  ;;  %v1324_v23 = vpop.f32.mrb[1].mxu0 }
 0x1b7   :  { %v229_v24 = vpop.f32.mrb[2].mxu0 }
 0x1b8   :  { %v1325_v25 = vpop.f32.mrb[3].mxu0  ;;  %1242 = vmatmul.mubr.msk.bf16.vlgmr.msra.gmra.mrb[0].mxu1 %vm274_vm4, %v233_v22 }
 0x1b9   :  { %1327 = vmatpush3.bf16.msra.mxu1 %v1416_v21  ;;  %1330 = vmatprep.mubr.msk.bf16.mxu1 %vm1657_vm0, %v1656_v1 }
 0x1ba   :  { %1328 = vmatprep.subr.bf16.mxu1 %v1656_v1 }
 0x1bd   :  { %1329 = vmatpush3.bf16.msra.mxu1 %v1417_v26 }
 0x1be   :  { %403 = vmatprep.subr.bf16.mxu1 %v1420_v27 }
 0x1c0   :  { %1331 = vmatmul.mubr.msk.bf16.vlgmr.msra.gmra.mrb[4].mxu1 %vm274_vm4, %v233_v22 }
 0x1c1   :  { %404 = vmatpush1.bf16.msra.mxu1 %v1418_v28  ;;  %435 = vmatprep.mubr.bf16.mxu1 %v1655_v0 }
 0x1c2   :  { %405 = vmatprep.subr.bf16.mxu1 %v1423_v29 }
 0x1c5   :  { %406 = vmatpush1.bf16.msra.mxu1 %v1421_v30 }
 0x1c6   :  { %1334 = vmatprep.subr.bf16.mxu1 %v1656_v1 }
 0x1c8   :  { %1250 = vmatmul.mubr.msk.bf16.vlgmr.msra.gmra.mrb[0].mxu1 %vm274_vm4, %v359_v32 }
 0x1c9   :  { %1335 = vmatpush3.bf16.msra.mxu1 %v1424_v33  ;;  %1338 = vmatprep.mubr.msk.bf16.mxu1 %vm1657_vm0, %v1656_v1 }
 0x1ca   :  { %1336 = vmatprep.subr.bf16.mxu1 %v1656_v1 }
 0x1cd   :  { %1337 = vmatpush3.bf16.msra.mxu1 %v1425_v34 }
 0x1ce   :  { %1342 = vmatprep.subr.bf16.mxu1 %v1656_v1 }
 0x1d0   :  { %1339 = vmatmul.mubr.msk.bf16.vlgmr.msra.gmra.mrb[8].mxu1 %vm274_vm4, %v359_v32 }
 0x1d1   :  { %1346 = vmatprep.mubr.msk.bf16.mxu1 %vm1657_vm0, %v1656_v1  ;;  %1343 = vmatpush3.bf16.msra.mxu1 %v1429_v37 }
 0x1d2   :  { %1344 = vmatprep.subr.bf16.mxu1 %v1656_v1 }
 0x1d5   :  { %1345 = vmatpush3.bf16.msra.mxu1 %v1433_v40 }
 0x1d6   :  { %1350 = vmatprep.subr.bf16.mxu1 %v1656_v1 }
 0x293   :  { %v353_v43 = vpop.f32.mrb[4].mxu1 }
 0x294   :  { %v1332_v44 = vpop.f32.mrb[5].mxu1 }
 0x295   :  { %v356_v45 = vpop.f32.mrb[6].mxu1  ;;  %v1927_v44 = vshrl.u32 %v119_v15, 7 }
 0x296   :  { %v1333_v46 = vpop.f32.mrb[7].mxu1  ;;  %v788_v45 = vunpack.c.0.s8 %v787_v42 }
 0x29b   :  { %v437_v47 = vpop.f32.mrb[0].mxu1 }
 0x29c   :  { %v1252_v48 = vmul.f32 -1.442695, %v437_v47  ;;  %v439_v49 = vpop.f32.mrb[1].mxu1 }
 0x29d   :  { %v441_v50 = vpop.f32.mrb[2].mxu1  ;;  %v1253_v52 = vmul.f32 -1.442695, %v439_v49 }
 0x29e   :  { %1446 = vpow2.f32 %v1252_v48  ;;  %v442_v51 = vpop.f32.mrb[3].mxu1  ;;  %v791_v50 = vsub.s32 %v788_v45, %v1927_v44 }
 0x29f   :  { %1448 = vpow2.f32 %v1253_v52 }
 0x2a3   :  { %v478_v53 = vpop.f32.mrb[8].mxu1 }
 0x2a4   :  { %v1340_v54 = vpop.f32.mrb[9].mxu1 }
 0x2a5   :  { %v481_v55 = vpop.f32.mrb[10].mxu1  ;;  %v1932_v54 = vsub.s32 0, %v1927_v44 }
 0x2a6   :  { %v1341_v56 = vpop.f32.mrb[11].mxu1 }
 0x2a7   :  { %v1935_v56 = vld [vmem:[#allocation3] sm:$0xff] }
 0x2a8   :  { %v1447_v57 = vpop.eup %1446 }
 0x2a9   :  { %v488_v58 = vadd.f32 1.0, %v1447_v57  ;;  %v1449_v59 = vpop.eup %1448 }
 0x2aa   :  { %v495_v60 = vadd.f32 1.0, %v1449_v59 }
 0x2ab   :  { %1450 = vrcp.f32 %v488_v58 }
 0x2ac   :  { %1452 = vrcp.f32 %v495_v60  ;;  %v1938_v60 = vld [vmem:[#allocation3 + $0x8] sm:$0xff] }
 0x2b5   :  { %v1451_v61 = vpop.eup %1450 }
 0x2b6   :  { %v498_v62 = vmul.f32 %v1451_v61, %v478_v53  ;;  %v1453_v2 = vpop.eup %1452 }
 0x2b7   :  { %v501_v3 = vsub.f32 1.0, %v1453_v2  ;;  %v503_v5 = vmul.f32 %v1453_v2, %v232_v31 }
 0x2b8   :  { %v499_v63 = vadd.f32 %v498_v62, %v353_v43 }
 0x2ba   :  { %1454 = vtanh.f32 %v499_v63 }
 0x2c4   :  { %v1455_v4 = vpop.eup %1454 }
 0x2c5   :  { %v502_v6 = vmul.f32 %v1455_v4, %v501_v3  ;;  %v1943_v3 = vld [vmem:[#allocation3 + $0x10] sm:$0xff] }
 0x2c7   :  { %v504_v7 = vadd.f32 %v503_v5, %v502_v6 }
 0x2c9   :  { %v507_v9 = vpack.c.bf16 %v504_v7, %v504_v7  ;;  %779 = vst.msk [vmem:[#allocation2] sm:$0xf] %vm115_vm3, %v504_v7 }
 0x2cb   :  { %1260 = vmatmul.mubr.msk.bf16.vlgmr.msra.gmra.mrb[4].mxu0 %vm274_vm4, %v507_v9  ;;  %1347 = vmatmul.mubr.msk.bf16.vlgmr.msra.gmra.mrb[12].mxu1 %vm274_vm4, %v507_v9 }
 0x2cc   :  { %677 = vmatpush1.bf16.msra.mxu0 %v1434_v8  ;;  %708 = vmatprep.mubr.bf16.mxu0 %v1655_v0  ;;  %v1442_v0 = vld [vmem:[%s2023_s9] sm:$0xff]   ;;  %s1660_s9 = smov [#allocation13]  }
 0x2cd   :  { %678 = vmatprep.subr.bf16.mxu0 %v1439_v10  ;;  %1351 = vmatpush3.bf16.msra.mxu1 %v1440_v11  ;;  %v1951_v10 = vld [vmem:[#allocation3 + $0x18] sm:$0xff]  ;;  %s1207_s10 = sshll.u32 %s1660_s9, 4  ;;  %s1208_s10 = int_to_ptr.vmem [resolvable:$true] %s1207_s10 }
 0x2ce   :  { %1352 = vmatprep.subr.bf16.mxu1 %v1656_v1  ;;  %1354 = vmatprep.mubr.msk.bf16.mxu1 %vm1657_vm0, %v1656_v1  ;;  %s1590_s16 = scalar_lea.vmem %s1208_s10, 128  ;;  %p1595_p13 = scmp.lt.s32.totalorder %s1208_s10, %s1208_s10 }
 0x2cf   :  { %p1591_p12 = scmp.ne.s32.totalorder %s1208_s10, %s1590_s16  ;;  %p1596_p0 = scmp.lt.s32.totalorder %s1590_s16, %s1590_s16 }
 0x2d0   :  { %679 = vmatpush1.bf16.msra.mxu0 %v1437_v12  ;;  %v1188_v17 = vld [vmem:[#allocation2] sm:$0xf] }
 0x2d1   :  { %1353 = vmatpush3.bf16.msra.mxu1 %v1441_v13  ;;  %1358 = vmatprep.subr.bf16.mxu0 %v1656_v1  ;;  %1190 = vst.msk [vmem:[#allocation13] sm:$0xf] %vm115_vm3, %v1188_v17  ;;  %v852_v17 = vsub.s32 %v1850_v16, %v1927_v44  ;;  %p1597_p1 = por %p1596_p0, %p1595_p13 }
 0x2d2   :  { %1366 = vmatprep.subr.bf16.mxu1 %v1656_v1 }
 0x2d3   :  { %p1598_p2 = pnand %p1597_p1, %p1591_p12 }
 0x2d4   :  { %1355 = vmatmul.mubr.msk.bf16.vlgmr.msra.gmra.mrb[16].mxu1 %vm274_vm4, %v632_v18 }
 0x2d5   :  { %1370 = vmatprep.mubr.msk.bf16.mxu1 %vm1657_vm0, %v1656_v1 }
 0x2d7   :  { %1268 = vmatmul.mubr.msk.bf16.vlgmr.msra.gmra.mrb[4].mxu0 %vm274_vm4, %v632_v18 }
 0x2d8   :  { %1362 = vmatprep.mubr.msk.bf16.mxu0 %vm1657_vm0, %v1656_v1  ;;  %1359 = vmatpush3.bf16.msra.mxu0 %v1442_v0 }
 0x2d9   :  { %1360 = vmatprep.subr.bf16.mxu0 %v1656_v1 }
 0x2dc   :  { %1361 = vmatpush3.bf16.msra.mxu0 %v1443_v19 }
 0x39e   :  { %v626_v20 = vpop.f32.mrb[12].mxu1 }
 0x39f   :  { %v1348_v21 = vpop.f32.mrb[13].mxu1 }
 0x3a0   :  { %v629_v22 = vpop.f32.mrb[14].mxu1 }
 0x3a1   :  { %v1349_v23 = vpop.f32.mrb[15].mxu1 }
 0x3a7   :  { %v751_v24 = vpop.f32.mrb[16].mxu1 }
 0x3a8   :  { %v1356_v25 = vpop.f32.mrb[17].mxu1 }
 0x3a9   :  { %v754_v26 = vpop.f32.mrb[18].mxu1 }
 0x3aa   :  { %v710_v27 = vpop.f32.mrb[4].mxu0  ;;  %v1357_v28 = vpop.f32.mrb[19].mxu1 }
 0x3ab   :  { %v1270_v29 = vmul.f32 -1.442695, %v710_v27  ;;  %v712_v30 = vpop.f32.mrb[5].mxu0 }
 0x3ac   :  { %v714_v31 = vpop.f32.mrb[6].mxu0  ;;  %v1271_v33 = vmul.f32 -1.442695, %v712_v30 }
 0x3ad   :  { %1456 = vpow2.f32 %v1270_v29  ;;  %v715_v32 = vpop.f32.mrb[7].mxu0  ;;  %v884_v31 = vsub.s32 1, %v1927_v44 }
 0x3ae   :  { %1458 = vpow2.f32 %v1271_v33  ;;  %v888_v32 = vsub.s32 2, %v1927_v44  ;;  %v892_v33 = vsub.s32 3, %v1927_v44 }
 0x3b7   :  { %v1457_v34 = vpop.eup %1456 }
 0x3b8   :  { %v761_v35 = vadd.f32 1.0, %v1457_v34  ;;  %v1459_v36 = vpop.eup %1458 }
 0x3b9   :  { %v768_v37 = vadd.f32 1.0, %v1459_v36 }
 0x3ba   :  { %1460 = vrcp.f32 %v761_v35 }
 0x3bb   :  { %1462 = vrcp.f32 %v768_v37 }
 0x3c4   :  { %v1461_v38 = vpop.eup %1460 }
 0x3c5   :  { %v771_v39 = vmul.f32 %v1461_v38, %v751_v24  ;;  %v1463_v43 = vpop.eup %1462 }
 0x3c6   :  { %v774_v46 = vsub.f32 1.0, %v1463_v43  ;;  %v776_v48 = vmul.f32 %v1463_v43, %v506_v14 }
 0x3c7   :  { %v772_v40 = vadd.f32 %v771_v39, %v626_v20 }
 0x3c9   :  { %1464 = vtanh.f32 %v772_v40 }
 0x3d3   :  { %v1465_v47 = vpop.eup %1464 }
 0x3d4   :  { %v775_v49 = vmul.f32 %v1465_v47, %v774_v46 }
 0x3d6   :  { %v777_v51 = vadd.f32 %v776_v48, %v775_v49 }
 0x3d8   :  { %780 = vst.msk [vmem:[#allocation2 + $0x4] sm:$0xf] %vm115_vm3, %v777_v51  ;;  %v1035_v52 = vpack.c.bf16 %v777_v51, %v777_v51  ;;  %v792_v53 = vrot.slane %v777_v51, %v791_v50 }
 0x3da   :  { %1363 = vmatmul.mubr.msk.bf16.vlgmr.msra.gmra.mrb[8].mxu0 %vm274_vm4, %v1035_v52  ;;  %v800_v55 = vrot.slane %v792_v53, %v791_v50  ;;  %v793_v15 = vcombine.high %v792_v53, %v792_v53 }
 0x3dc   :  { %v813_v57 = vrot.slane %v800_v55, %v1932_v54  ;;  %v807_v58 = vrot.slane %v793_v15, %v791_v50  ;;  %v808_v59 = vcombine.high %v800_v55, %v800_v55 }
 0x3de   :  { %v830_v61 = vmul.f32 %v813_v57, %v1935_v56  ;;  %v817_v62 = vrot.slane %v807_v58, %v1932_v54  ;;  %v821_v63 = vrot.slane %v808_v59, %v1932_v54  ;;  %v809_v2 = vcombine.high %v807_v58, %v807_v58 }
 0x3df   :  { %v1189_v4 = vld [vmem:[#allocation2 + $0x4] sm:$0xf] }
 0x3e0   :  { %v834_v5 = vsel %vm274_vm4, %v830_v61, 0.0  ;;  %v831_v6 = vmul.f32 %v817_v62, %v1938_v60  ;;  %1191 = vst.msk [vmem:[#allocation13 + $0x4] sm:$0xf] %vm115_vm3, %v1189_v4  ;;  %v832_v8 = vmul.f32 %v821_v63, %v1943_v3  ;;  %v825_v9 = vrot.slane %v809_v2, %v1932_v54 }
 0x3e1   :  { %835 = vadd.xlane.f32.xlu0 %v834_v5 }
 0x3e2   :  { %v837_v7 = vsel %vm274_vm4, %v831_v6, 0.0  ;;  %v840_v11 = vsel %vm274_vm4, %v832_v8, 0.0  ;;  %v833_v12 = vmul.f32 %v825_v9, %v1951_v10 }
 0x3e3   :  { %838 = vadd.xlane.f32.xlu1 %v837_v7 }
 0x3e4   :  { %v843_v13 = vsel %vm274_vm4, %v833_v12, 0.0 }
 0x3e7   :  { %841 = vadd.xlane.f32.xlu1 %v840_v11 }
 0x3eb   :  { %844 = vadd.xlane.f32.xlu1 %v843_v13 }
 0x46e   :  { %v836_v18 = vpop.xlane.xlu0 %835 }
 0x46f   :  { %v853_v21 = vrot.slane %v836_v18, %v852_v17 }
 0x470   :  { %v839_v14 = vpop.xlane.xlu1 %838 }
 0x471   :  { %v857_v19 = vrot.slane %v839_v14, %v852_v17 }
 0x473   :  { %v867_v24 = vsel %vm866_vm5, %v857_v19, %v853_v21 }
 0x474   :  { %v842_v0 = vpop.xlane.xlu1 %841 }
 0x475   :  { %v861_v20 = vrot.slane %v842_v0, %v852_v17 }
 0x477   :  { %v869_v25 = vsel %vm868_vm6, %v861_v20, %v867_v24 }
 0x478   :  { %v845_v22 = vpop.xlane.xlu1 %844 }
 0x479   :  { %v865_v23 = vrot.slane %v845_v22, %v852_v17 }
 0x47b   :  { %v871_v26 = vsel %vm870_vm7, %v865_v23, %v869_v25 }
 0x47c   :  { %v874_v27 = vsel %vm873_vm8, %v871_v26, -inf }
 0x47d   :  { %875 = vmax.xlane.f32.xlu1 %v874_v27 }
 0x4ad   :  { %v1962_v16 = vpop.f32.mrb[8].mxu0 }
 0x4ae   :  { %v1364_v28 = vpop.f32.mrb[9].mxu0 }
 0x4af   :  { %v1092_v29 = vpop.f32.mrb[10].mxu0 }
 0x4b0   :  { %v1365_v30 = vpop.f32.mrb[11].mxu0 }
 0x50a   :  { %v876_v34 = vpop.xlane.xlu1 %875 }
 0x50b   :  { %v881_v35 = vrot.slane %v876_v34, %v1932_v54  ;;  %v885_v36 = vrot.slane %v876_v34, %v884_v31  ;;  %v889_v37 = vrot.slane %v876_v34, %v888_v32  ;;  %v893_v38 = vrot.slane %v876_v34, %v892_v33 }
 0x50d   :  { %v898_v39 = vsub.f32 %v836_v18, %v881_v35  ;;  %v899_v40 = vsub.f32 %v839_v14, %v885_v36  ;;  %v900_v41 = vsub.f32 %v842_v0, %v889_v37  ;;  %v901_v45 = vsub.f32 %v845_v22, %v893_v38  ;;  %v1445_v18 = vld [vmem:[#allocation9 + $0x8] sm:$0xff]  }
 0x50f   :  { %v902_v42 = vmul.f32 1.442695, %v898_v39  ;;  %v906_v43 = vmul.f32 1.442695, %v900_v41  ;;  %v904_v46 = vmul.f32 1.442695, %v899_v40 }
 0x510   :  { %v908_v47 = vmul.f32 1.442695, %v901_v45 }
 0x511   :  { %1466 = vpow2.f32 %v902_v42 }
 0x512   :  { %1468 = vpow2.f32 %v906_v43 }
 0x513   :  { %1470 = vpow2.f32 %v904_v46 }
 0x514   :  { %1472 = vpow2.f32 %v908_v47 }
 0x51b   :  { %v1467_v48 = vpop.eup %1466 }
 0x51c   :  { %915 = vperm.xlu1 %1401, %v1467_v48   ;;  %v1469_v44 = vpop.eup %1468 }
 0x51d   :  { %921 = vperm.xlu0 %1400, %v1469_v44   ;;  %v1471_v49 = vpop.eup %1470 }
 0x51e   :  { %v1473_v50 = vpop.eup %1472 }
 0x520   :  { %918 = vperm.xlu1 %1401, %v1471_v49  }
 0x524   :  { %924 = vperm.xlu1 %1401, %v1473_v50  }
 0x59b   :  { %v916_v51 = vpop.permute.xlu1 %915 }
 0x59c   :  { %v922_v53 = vpop.permute.xlu0 %921  ;;  %v929_v55 = vrot.slane %v916_v51, %v852_v17 }
 0x59d   :  { %v937_v58 = vrot.slane %v922_v53, %v852_v17 }
 0x59f   :  { %v919_v52 = vpop.permute.xlu1 %918 }
 0x5a0   :  { %v933_v15 = vrot.slane %v919_v52, %v852_v17 }
 0x5a2   :  { %v942_v57 = vsel %vm866_vm5, %v933_v15, %v929_v55 }
 0x5a3   :  { %v925_v59 = vpop.permute.xlu1 %924  ;;  %v943_v62 = vsel %vm868_vm6, %v937_v58, %v942_v57 }
 0x5a4   :  { %v941_v61 = vrot.slane %v925_v59, %v852_v17  ;;  %v1444_v17 = vld [vmem:[#allocation9] sm:$0xff]  }
 0x5a5   :  { %1367 = vmatpush3.bf16.msra.mxu1 %v1444_v17 }
 0x5a6   :  { %v944_v63 = vsel %vm870_vm7, %v941_v61, %v943_v62  ;;  %1368 = vmatprep.subr.bf16.mxu1 %v1656_v1 }
 0x5a7   :  { %v946_v2 = vsel %vm873_vm8, %v944_v63, 0.0  ;;  %v1278_v63 = vld [vmem:[#allocation11] ss:$0 sm:$0xff] }
 0x5a8   :  { %947 = vadd.xlane.f32.xlu1 %v946_v2 }
 0x5a9   :  { %1369 = vmatpush3.bf16.msra.mxu1 %v1445_v18 }
 0x635   :  { %v948_v4 = vpop.xlane.xlu1 %947 }
 0x636   :  { %1474 = vrcp.f32 %v948_v4 }
 0x640   :  { %v1475_v5 = vpop.eup %1474 }
 0x641   :  { %v954_v6 = vrot.slane %v1475_v5, %v1932_v54  ;;  %v958_v8 = vrot.slane %v1475_v5, %v884_v31  ;;  %v962_v11 = vrot.slane %v1475_v5, %v888_v32  ;;  %v966_v13 = vrot.slane %v1475_v5, %v892_v33 }
 0x643   :  { %v971_v7 = vmul.f32 %v1467_v48, %v954_v6  ;;  %v972_v9 = vmul.f32 %v1471_v49, %v958_v8  ;;  %v973_v12 = vmul.f32 %v1469_v44, %v962_v11  ;;  %v974_v14 = vmul.f32 %v1473_v50, %v966_v13 }
 0x645   :  { %977 = vperm.xlu0 %1400, %v971_v7  }
 0x649   :  { %982 = vperm.xlu0 %1400, %v972_v9  }
 0x64d   :  { %987 = vperm.xlu0 %1400, %v973_v12  }
 0x651   :  { %992 = vperm.xlu0 %1400, %v974_v14  }
 0x6c4   :  { %v978_v0 = vpop.permute.xlu0 %977 }
 0x6c5   :  { %v995_v54 = vmul.f32 %v978_v0, %v1935_v56 }
 0x6c7   :  { %v999_v19 = vsel %vm274_vm4, %v995_v54, 0.0 }
 0x6c8   :  { %v1000_v20 = vrot.slane %v999_v19, 4  ;;  %v983_v21 = vpop.permute.xlu0 %982 }
 0x6c9   :  { %v996_v22 = vmul.f32 %v983_v21, %v1938_v60 }
 0x6ca   :  { %v1001_v23 = vadd.f32 %v1000_v20, %v999_v19 }
 0x6cb   :  { %v1006_v24 = vsel %vm274_vm4, %v996_v22, 0.0 }
 0x6cc   :  { %v1002_v25 = vrot.slane %v1001_v23, 2  ;;  %v1007_v26 = vrot.slane %v1006_v24, 4  ;;  %v988_v27 = vpop.permute.xlu0 %987 }
 0x6cd   :  { %v997_v28 = vmul.f32 %v988_v27, %v1943_v3 }
 0x6ce   :  { %v1008_v29 = vadd.f32 %v1007_v26, %v1006_v24  ;;  %v1003_v30 = vadd.f32 %v1002_v25, %v1001_v23 }
 0x6cf   :  { %v1013_v1 = vsel %vm274_vm4, %v997_v28, 0.0 }
 0x6d0   :  { %v1009_v31 = vrot.slane %v1008_v29, 2  ;;  %v1014_v56 = vrot.slane %v1013_v1, 4  ;;  %v993_v32 = vpop.permute.xlu0 %992  ;;  %v1004_v36 = vrot.slane %v1003_v30, 1 }
 0x6d1   :  { %v998_v33 = vmul.f32 %v993_v32, %v1951_v10 }
 0x6d2   :  { %v1010_v34 = vadd.f32 %v1009_v31, %v1008_v29  ;;  %v1015_v35 = vadd.f32 %v1014_v56, %v1013_v1  ;;  %v1005_v42 = vadd.f32 %v1004_v36, %v1003_v30 }
 0x6d3   :  { %v1020_v60 = vsel %vm274_vm4, %v998_v33, 0.0 }
 0x6d4   :  { %v1011_v37 = vrot.slane %v1010_v34, 1  ;;  %v1016_v38 = vrot.slane %v1015_v35, 2  ;;  %v1021_v39 = vrot.slane %v1020_v60, 4  ;;  %v1027_v44 = vpack.c.bf16 %v1005_v42, %v1005_v42 }
 0x6d6   :  { %v1012_v40 = vadd.f32 %v1011_v37, %v1010_v34  ;;  %v1017_v41 = vadd.f32 %v1016_v38, %v1015_v35  ;;  %v1022_v3 = vadd.f32 %v1021_v39, %v1020_v60  ;;  %v1099_v53 = vunpack.c.l.b16 %v1027_v44 }
 0x6d8   :  { %v1018_v43 = vrot.slane %v1017_v41, 1  ;;  %v1023_v45 = vrot.slane %v1022_v3, 2  ;;  %v1028_v46 = vpack.c.bf16 %v1012_v40, %v1012_v40 }
 0x6da   :  { %v1019_v47 = vadd.f32 %v1018_v43, %v1017_v41  ;;  %v1024_v48 = vadd.f32 %v1023_v45, %v1022_v3  ;;  %v1100_v50 = vunpack.c.l.b16 %v1028_v46 }
 0x6dc   :  { %v1029_v49 = vpack.c.bf16 %v1019_v47, %v1019_v47  ;;  %v1025_v10 = vrot.slane %v1024_v48, 1  ;;  %v1103_v15 = vsel %vm866_vm5, %v1100_v50, %v1099_v53 }
 0x6de   :  { %v1026_v51 = vadd.f32 %v1025_v10, %v1024_v48  ;;  %v1101_v52 = vunpack.c.l.b16 %v1029_v49 }
 0x6e0   :  { %v1030_v55 = vpack.c.bf16 %v1026_v51, %v1026_v51  ;;  %v1104_v58 = vsel %vm868_vm6, %v1101_v52, %v1103_v15 }
 0x6e2   :  { %v1102_v57 = vunpack.c.l.b16 %v1030_v55 }
 0x6e4   :  { %v1105_v59 = vsel %vm870_vm7, %v1102_v57, %v1104_v58 }
 0x6e5   :  { %v1106_v61 = vpack.c.b16 %v1105_v59, %v1105_v59 }
 0x6e7   :  { %1371 = vmatmul.mubr.msk.bf16.vlgmr.msra.gmra.mrb[20].mxu1 %vm274_vm4, %v1106_v61 }
 0x7ba   :  { %v1156_v62 = vpop.f32.mrb[20].mxu1 }
 0x7bb   :  { %v1157_v2 = vadd.f32 %v1156_v62, %v1962_v16  ;;  %v1372_v4 = vpop.f32.mrb[21].mxu1 }
 0x7bc   :  { %v1159_v5 = vpop.f32.mrb[22].mxu1 }
 0x7bd   :  { %v1169_v6 = vadd.f32 %v1278_v63, %v1157_v2  ;;  %v1373_v7 = vpop.f32.mrb[23].mxu1 }
 0x7bf   :  { %v1171_v8 = vsel %vm1170_vm9, %v1169_v6, -inf }
 0x7c0   :  { %1172 = vmax.xlane.f32.xlu0 %v1171_v8 }
 0x84d   :  { %v1173_v9 = vpop.xlane.xlu0 %1172 }
 0x84e   :  { %v1174_v11 = vsub.f32 %v1169_v6, %v1173_v9 }
 0x850   :  { %v1175_v12 = vmul.f32 1.442695, %v1174_v11 }
 0x852   :  { %1476 = vpow2.f32 %v1175_v12 }
 0x85c   :  { %v1477_v13 = vpop.eup %1476 }
 0x85d   :  { %v1177_v14 = vsel %vm1170_vm9, %v1477_v13, 0.0 }
 0x85e   :  { %1178 = vadd.xlane.f32.xlu1 %v1177_v14 }
 0x85f   :  { %1601 = shalt.err (!%p1598_p2)
}
 0x860   :  { %s1602_s1 = scalar_lea.hbm %s2026_s12, 128 }
 0x861   :  { %p1603_p3 = scmp.ne.s32.totalorder %s2026_s12, %s1602_s1  ;;  %p1606_p4 = scmp.lt.u32.totalorder %s1602_s1, %s2026_s12 }
 0x863   :  { %p1608_p5 = pnand %p1606_p4, %p1603_p3 }
 0x865   :  { %1611 = shalt.err (!%p1608_p5)
}
 0x866   :  { %1213 = dma.vmem_to_hbm [thread:$0]  %s1208_s10, 128, %s2026_s12, [#allocation14], %s1648_s6, %s1648_s6, %s1649_s22  }
 0x867   :  { %s1661_s26 = smov [#allocation12]  }
 0x868   :  { %s1198_s27 = sshll.u32 %s1661_s26, 4  ;;  %s1199_s27 = int_to_ptr.vmem [resolvable:$true] %s1198_s27 }
 0x869   :  { %s1612_s28 = scalar_lea.vmem %s1199_s27, 64  ;;  %p1617_p7 = scmp.lt.s32.totalorder %s1199_s27, %s1199_s27 }
 0x86a   :  { %p1613_p6 = scmp.ne.s32.totalorder %s1199_s27, %s1612_s28  ;;  %p1618_p8 = scmp.lt.s32.totalorder %s1612_s28, %s1612_s28 }
 0x86c   :  { %p1619_p9 = por %p1618_p8, %p1617_p7 }
 0x86e   :  { %p1620_p10 = pnand %p1619_p9, %p1613_p6 }
 0x8eb   :  { %v1179_v16 = vpop.xlane.xlu1 %1178 }
 0x8ec   :  { %1478 = vlog2.f32 %v1179_v16 }
 0x8f6   :  { %v1479_v17 = vpop.eup %1478 }
 0x8f7   :  { %v1181_v18 = vmul.f32 0.6931472, %v1479_v17 }
 0x8f9   :  { %v1182_v0 = vadd.f32 %v1181_v18, %v1173_v9 }
 0x8fb   :  { %v1183_v54 = vsub.f32 %v1169_v6, %v1182_v0 }
 0x8fd   :  { %1184 = vst [vmem:[#allocation12] sm:$0xf] %v1183_v54 }
 0x8fe   :  { %1623 = shalt.err (!%p1620_p10)
}
 0x8ff   :  { %s1624_s12 = scalar_lea.hbm %s2025_s11, 64 }
 0x900   :  { %p1625_p11 = scmp.ne.s32.totalorder %s2025_s11, %s1624_s12  ;;  %p1628_p12 = scmp.lt.u32.totalorder %s1624_s12, %s2025_s11 }
 0x902   :  { %p1630_p13 = pnand %p1628_p12, %p1625_p11 }
 0x904   :  { %1633 = shalt.err (!%p1630_p13)
}
 0x905   :  { %1201 = dma.vmem_to_hbm [thread:$0]  %s1199_s27, 64, %s2025_s11, [#allocation5]  }
 0x906   :  { %1640 = dma.done.wait [#allocation5], 64  }
 0x907   :  { %1641 = vsyncadd [#allocation5], 4294967232 }
 0x908   :  { %1642 = dma.done.wait [#allocation14], 128  }
 0x909   :  { %1643 = vsyncadd [#allocation14], 4294967168 }
 0x90a   :  { %1220 = vsyncpa [#allocation4], 1 }
 0x90b   :  { %1221 = vsyncpa [#allocation7], 1 }
 0x90c   :  { %1222 = vsyncpa [#allocation10], 1 }
 0x90d   :  { %1223 = vsyncpa [#allocation5], 1 }
 0x90e   :  { %1224 = vsyncpa [#allocation14], 1 }

</bundles_post_ra>
